<compile_context>
chip_gen: v7x
topology: tpu7x:2x2x1
jax: 0.10.0
libtpu: 0.0.40
codegen_flags: <defaults>
</compile_context>

<pallas_src>
import math

import jax
import jax.numpy as jnp
from jax.experimental import pallas as pl
from jax.experimental.pallas import tpu as pltpu


def _round_up(n, m):
    return ((n + m - 1) // m) * m


# --------------------------------------------------------------------------
# Fused MLP kernel for one batch tile:
#   h = relu(h @ W_l + b_l)  for each hidden layer, then  out = h @ Wh + bh.
# x / W* are bf16 (MXU operands); accumulation + bias/ReLU stay f32.
# --------------------------------------------------------------------------
def make_mlp_kernel(num_layers):
    # num_layers = number of (W, b) pairs INCLUDING the head.
    def kernel(x_ref, *refs):
        o_ref = refs[-1]
        h = x_ref[...]
        for l in range(num_layers):
            w = refs[2 * l][...]
            b = refs[2 * l + 1][...]
            h = jnp.dot(h.astype(jnp.bfloat16), w,
                        preferred_element_type=jnp.float32) + b
            if l < num_layers - 1:          # ReLU on hidden layers only
                h = jnp.maximum(h, 0.0)
        o_ref[...] = h.astype(o_ref.dtype)
    return kernel


# --------------------------------------------------------------------------
# One-time parameter prep: cast weights to bf16 MXU operands, biases to f32
# row vectors.  No feature padding (full-array BlockSpecs make it legal and
# the unpadded shapes minimize HBM/VMEM traffic).  Done once at init.
# --------------------------------------------------------------------------
def prepare_mlp_params(layer_params):
    """layer_params: list of (w [in,out] f32, b [out] f32) incl. the head."""
    prepped = []
    for w, b in layer_params:
        prepped.append((jnp.asarray(w, jnp.bfloat16),
                        jnp.asarray(b, jnp.float32).reshape(1, -1)))
    return prepped


# --------------------------------------------------------------------------
# Forward: batch-tiled pallas_call.  Weights/biases have constant index_maps
# (loaded into VMEM once); x/out tiles stream with double-buffered DMA.
# --------------------------------------------------------------------------
def mlp_forward_pallas(x_feat, params, *, tile_b=1024):
    B, D = x_feat.shape
    O = params[-1][0].shape[1]

    if x_feat.dtype != jnp.bfloat16:
        x_feat = x_feat.astype(jnp.bfloat16)

    # Batch tile: large tiles amortize the ~0.35us/grid-step overhead; minimum
    # 16 rows for bf16 sublane packing.  Cap the tile so the batch grid keeps
    # >= 2 steps when the batch allows it (v7x: work for both TensorCores).
    b16 = _round_up(B, 16)
    tb = min(tile_b, b16)
    if b16 > 16 and b16 // tb < 2:
        tb = _round_up(pl.cdiv(b16, 2), 16)
    Bp = _round_up(B, tb)
    if Bp != B:
        # Only when B is not a tile multiple (never for big aligned batches).
        # Padded rows produce garbage that is masked off by the slice below.
        x_feat = jnp.pad(x_feat, ((0, Bp - B), (0, 0)))

    in_specs = [pl.BlockSpec((tb, D), lambda i: (i, 0))]       # x: streamed
    args = [x_feat]
    for w, b in params:                                        # VMEM-resident
        in_specs.append(pl.BlockSpec(w.shape, lambda i: (0, 0)))
        in_specs.append(pl.BlockSpec(b.shape, lambda i: (0, 0)))
        args.extend((w, b))
    # TODO(synk): pipeline_mode=pl.Buffered(1) on the constant-index weight
    # specs would drop their second buffer; skipped since VMEM is nowhere near
    # a constraint at these sizes.

    out_p = pl.pallas_call(
        make_mlp_kernel(len(params)),
        out_shape=jax.ShapeDtypeStruct((Bp, O), jnp.float32),
        grid=(Bp // tb,),
        in_specs=in_specs,
        out_specs=pl.BlockSpec((tb, O), lambda i: (i, 0)),
        compiler_params=pltpu.CompilerParams(
            dimension_semantics=("parallel",),     # v7x: shard across 2 TCs
            vmem_limit_bytes=32 * 1024 * 1024,     # portable to v7x
        ),
    )(*args)
    return out_p[:B] if Bp != B else out_p


# --------------------------------------------------------------------------
# Plain-JAX glue mirroring the PyTorch forward: embedding gather for the
# categorical index columns, then concat [x_categ, x_num].  Emits bf16
# directly so no separate pad/cast pass is needed before the kernel.
# Note: as in the PyTorch module, categories[i] is used both as the number of
# columns in categorical group i and as that group's table cardinality.
# TODO(synk): could be fused into the kernel (scalar-prefetched indices +
# VMEM-resident tables) to avoid materializing x_feat in HBM for large B.
# --------------------------------------------------------------------------
def embed_and_concat(x, emb_tables, *, num_numerical, categories):
    x_num = x[:, :num_numerical]
    x_cat = x[:, num_numerical:].astype(jnp.int32)
    pieces = []
    start = 0
    for i, c in enumerate(categories):
        idx = x_cat[:, start:start + c]                       # [B, c]
        e = jnp.take(emb_tables[i], idx, axis=0)              # [B, c, E]
        pieces.append(e.reshape(e.shape[0], -1).astype(jnp.bfloat16))
        start += c
    if num_numerical > 0:
        pieces.append(x_num.astype(jnp.bfloat16))
    return pieces[0] if len(pieces) == 1 else jnp.concatenate(pieces, axis=-1)


def init_linear(key, fan_in, fan_out):
    kw, kb = jax.random.split(key)
    bound = 1.0 / math.sqrt(fan_in)
    w = jax.random.uniform(kw, (fan_in, fan_out), jnp.float32, -bound, bound)
    b = jax.random.uniform(kb, (fan_out,), jnp.float32, -bound, bound)
    return w, b


if __name__ == "__main__":
    # Small synthetic configuration (eval-mode forward; dropout -> no-op).
    # TODO(synk): training-mode F.dropout is stochastic; not modeled here.
    B = 8
    num_numerical = 4
    categories = [3, 5]                 # cardinalities of categorical groups
    embedding_dim = 2
    hidden_layer_dims = [32, 32]
    output_dim = 3

    D_in = embedding_dim * sum(categories) + num_numerical   # 2*8 + 4 = 20

    key = jax.random.PRNGKey(0)
    (k_num, k_cat0, k_cat1, k_emb0, k_emb1,
     k_l1, k_l2, k_head) = jax.random.split(key, 8)

    # Deterministic parameters.
    emb_tables = [
        0.1 * jax.random.normal(k_emb0, (categories[0], embedding_dim), jnp.float32),
        0.1 * jax.random.normal(k_emb1, (categories[1], embedding_dim), jnp.float32),
    ]
    w1, b1 = init_linear(k_l1, D_in, hidden_layer_dims[0])
    w2, b2 = init_linear(k_l2, hidden_layer_dims[0], hidden_layer_dims[1])
    wh, bh = init_linear(k_head, hidden_layer_dims[1], output_dim)

    # One-time parameter prep (cast only; no feature padding) — hoisted out of
    # the forward path.
    params = prepare_mlp_params([(w1, b1), (w2, b2), (wh, bh)])

    # Deterministic input: numerical floats + integer-valued categorical cols.
    x_num = jax.random.normal(k_num, (B, num_numerical), jnp.float32)
    x_cat0 = jax.random.randint(k_cat0, (B, categories[0]), 0, categories[0])
    x_cat1 = jax.random.randint(k_cat1, (B, categories[1]), 0, categories[1])
    x = jnp.concatenate(
        [x_num, x_cat0.astype(jnp.float32), x_cat1.astype(jnp.float32)], axis=1
    )   # [B, num_numerical + sum(categories)] = [8, 12]

    # Forward: JAX glue for embeddings, Pallas kernel for the MLP hot path.
    x_feat = embed_and_concat(x, emb_tables,
                              num_numerical=num_numerical, categories=categories)
    out = mlp_forward_pallas(x_feat, params)
    out = jax.block_until_ready(out)

    # Pure-JAX f32 reference of the kernel math (same bf16-rounded x_feat).
    # Tolerance reflects bf16 matmul operands with f32 accumulation.
    xf = x_feat.astype(jnp.float32)
    h = jnp.maximum(xf @ w1 + b1, 0.0)
    h = jnp.maximum(h @ w2 + b2, 0.0)
    ref = h @ wh + bh
    assert out.shape == (B, output_dim), out.shape
    err = jnp.max(jnp.abs(out - ref))
    assert jnp.allclose(out, ref, atol=5e-2, rtol=5e-2), err

    print("KERNEL_OK")
</pallas_src>

<mosaic_0001>
module attributes {stable_mosaic.version = 11 : i64} {
  func.func @kernel(%arg0: i32, %arg1: memref<16x20xbf16, #tpu.memory_space<vmem>>, %arg2: memref<20x32xbf16, #tpu.memory_space<vmem>>, %arg3: memref<1x32xf32, #tpu.memory_space<vmem>>, %arg4: memref<32x32xbf16, #tpu.memory_space<vmem>>, %arg5: memref<1x32xf32, #tpu.memory_space<vmem>>, %arg6: memref<32x3xbf16, #tpu.memory_space<vmem>>, %arg7: memref<1x3xf32, #tpu.memory_space<vmem>>, %arg8: memref<16x3xf32, #tpu.memory_space<vmem>>) attributes {dimension_semantics = [#tpu.dimension_semantics<parallel>], iteration_bounds = array<i64: 1>, scalar_prefetch = 0 : i64, scratch_operands = 0 : i64, tpu.core_type = #tpu.core_type<tc>, window_params = [{transform_indices = @transform_0, window_bounds = array<i64: 16, 20>}, {pipeline_mode = #tpu.pipeline_mode<synchronous>, transform_indices = @transform_1, window_bounds = array<i64: 20, 32>}, {pipeline_mode = #tpu.pipeline_mode<synchronous>, transform_indices = @transform_2, window_bounds = array<i64: 1, 32>}, {pipeline_mode = #tpu.pipeline_mode<synchronous>, transform_indices = @transform_3, window_bounds = array<i64: 32, 32>}, {pipeline_mode = #tpu.pipeline_mode<synchronous>, transform_indices = @transform_4, window_bounds = array<i64: 1, 32>}, {pipeline_mode = #tpu.pipeline_mode<synchronous>, transform_indices = @transform_5, window_bounds = array<i64: 32, 3>}, {pipeline_mode = #tpu.pipeline_mode<synchronous>, transform_indices = @transform_6, window_bounds = array<i64: 1, 3>}, {transform_indices = @transform_7, window_bounds = array<i64: 16, 3>}]} {
    %c0 = arith.constant 0 : index
    %c0_0 = arith.constant 0 : index
    %0 = vector.load %arg1[%c0, %c0_0] : memref<16x20xbf16, #tpu.memory_space<vmem>>, vector<16x20xbf16>
    %c0_1 = arith.constant 0 : index
    %c0_2 = arith.constant 0 : index
    %1 = vector.load %arg2[%c0_1, %c0_2] : memref<20x32xbf16, #tpu.memory_space<vmem>>, vector<20x32xbf16>
    %c0_3 = arith.constant 0 : index
    %c0_4 = arith.constant 0 : index
    %2 = vector.load %arg3[%c0_3, %c0_4] : memref<1x32xf32, #tpu.memory_space<vmem>>, vector<1x32xf32>
    %cst = arith.constant dense<0.000000e+00> : vector<16x32xf32>
    %3 = tpu.matmul %0, %1, %cst {dimension_numbers = #tpu.dot_dimension_numbers<[1], [0], [0], [1], [0, 0, 1, 1], [], []>} : vector<16x20xbf16>, vector<20x32xbf16>, vector<16x32xf32> -> vector<16x32xf32>
    %4 = vector.broadcast %2 : vector<1x32xf32> to vector<16x32xf32>
    %5 = arith.addf %3, %4 : vector<16x32xf32>
    %cst_5 = arith.constant 0.000000e+00 : f32
    %6 = vector.broadcast %cst_5 : f32 to vector<16x32xf32>
    %7 = arith.maximumf %5, %6 : vector<16x32xf32>
    %c0_6 = arith.constant 0 : index
    %c0_7 = arith.constant 0 : index
    %8 = vector.load %arg4[%c0_6, %c0_7] : memref<32x32xbf16, #tpu.memory_space<vmem>>, vector<32x32xbf16>
    %c0_8 = arith.constant 0 : index
    %c0_9 = arith.constant 0 : index
    %9 = vector.load %arg5[%c0_8, %c0_9] : memref<1x32xf32, #tpu.memory_space<vmem>>, vector<1x32xf32>
    %10 = arith.truncf %7 : vector<16x32xf32> to vector<16x32xbf16>
    %cst_10 = arith.constant dense<0.000000e+00> : vector<16x32xf32>
    %11 = tpu.matmul %10, %8, %cst_10 {dimension_numbers = #tpu.dot_dimension_numbers<[1], [0], [0], [1], [0, 0, 1, 1], [], []>} : vector<16x32xbf16>, vector<32x32xbf16>, vector<16x32xf32> -> vector<16x32xf32>
    %12 = vector.broadcast %9 : vector<1x32xf32> to vector<16x32xf32>
    %13 = arith.addf %11, %12 : vector<16x32xf32>
    %cst_11 = arith.constant 0.000000e+00 : f32
    %14 = vector.broadcast %cst_11 : f32 to vector<16x32xf32>
    %15 = arith.maximumf %13, %14 : vector<16x32xf32>
    %c0_12 = arith.constant 0 : index
    %c0_13 = arith.constant 0 : index
    %16 = vector.load %arg6[%c0_12, %c0_13] : memref<32x3xbf16, #tpu.memory_space<vmem>>, vector<32x3xbf16>
    %c0_14 = arith.constant 0 : index
    %c0_15 = arith.constant 0 : index
    %17 = vector.load %arg7[%c0_14, %c0_15] : memref<1x3xf32, #tpu.memory_space<vmem>>, vector<1x3xf32>
    %18 = arith.truncf %15 : vector<16x32xf32> to vector<16x32xbf16>
    %cst_16 = arith.constant dense<0.000000e+00> : vector<16x3xf32>
    %19 = tpu.matmul %18, %16, %cst_16 {dimension_numbers = #tpu.dot_dimension_numbers<[1], [0], [0], [1], [0, 0, 1, 1], [], []>} : vector<16x32xbf16>, vector<32x3xbf16>, vector<16x3xf32> -> vector<16x3xf32>
    %20 = vector.broadcast %17 : vector<1x3xf32> to vector<16x3xf32>
    %21 = arith.addf %19, %20 : vector<16x3xf32>
    %c0_17 = arith.constant 0 : index
    %c0_18 = arith.constant 0 : index
    %22 = vector.load %arg8[%c0_17, %c0_18] : memref<16x3xf32, #tpu.memory_space<vmem>>, vector<16x3xf32>
    tpu.vector_store %arg8[%c0_17, %c0_18], %21 {strides = array<i32>} : memref<16x3xf32, #tpu.memory_space<vmem>>, vector<16x3xf32>,
    return
  }
  func.func @transform_0(%arg0: i32) -> (i32, i32) {
    %c0_i32 = arith.constant 0 : i32
    %c0_i32_0 = arith.constant 0 : i32
    return %arg0, %c0_i32 : i32, i32
  }
  func.func @transform_1(%arg0: i32) -> (i32, i32) {
    %c0_i32 = arith.constant 0 : i32
    %c0_i32_0 = arith.constant 0 : i32
    %c0_i32_1 = arith.constant 0 : i32
    return %c0_i32, %c0_i32_0 : i32, i32
  }
  func.func @transform_2(%arg0: i32) -> (i32, i32) {
    %c0_i32 = arith.constant 0 : i32
    %c0_i32_0 = arith.constant 0 : i32
    %c0_i32_1 = arith.constant 0 : i32
    return %c0_i32, %c0_i32_0 : i32, i32
  }
  func.func @transform_3(%arg0: i32) -> (i32, i32) {
    %c0_i32 = arith.constant 0 : i32
    %c0_i32_0 = arith.constant 0 : i32
    %c0_i32_1 = arith.constant 0 : i32
    return %c0_i32, %c0_i32_0 : i32, i32
  }
  func.func @transform_4(%arg0: i32) -> (i32, i32) {
    %c0_i32 = arith.constant 0 : i32
    %c0_i32_0 = arith.constant 0 : i32
    %c0_i32_1 = arith.constant 0 : i32
    return %c0_i32, %c0_i32_0 : i32, i32
  }
  func.func @transform_5(%arg0: i32) -> (i32, i32) {
    %c0_i32 = arith.constant 0 : i32
    %c0_i32_0 = arith.constant 0 : i32
    %c0_i32_1 = arith.constant 0 : i32
    return %c0_i32, %c0_i32_0 : i32, i32
  }
  func.func @transform_6(%arg0: i32) -> (i32, i32) {
    %c0_i32 = arith.constant 0 : i32
    %c0_i32_0 = arith.constant 0 : i32
    %c0_i32_1 = arith.constant 0 : i32
    return %c0_i32, %c0_i32_0 : i32, i32
  }
  func.func @transform_7(%arg0: i32) -> (i32, i32) {
    %c0_i32 = arith.constant 0 : i32
    %c0_i32_0 = arith.constant 0 : i32
    return %arg0, %c0_i32 : i32, i32
  }
}

</mosaic_0001>

<bundles_post_ra>
// kernel: tpu_custom_call.1
= control target key start
LH: loop header
LB: loop body
LE: loop exit
PB: predicated region body
PF: predicated region fallthrough
CT: control target
= control target key end

     0   :  { %12 = vsyncpa [#allocation3], 0  ;;  %s347_s24 = smov [#allocation2]   ;;  %s439_s0 = inlined_call_operand.hbm [shape: bf16[16,20], index: 0, kind: input, shape index: {}]   ;;  %s440_s1 = inlined_call_operand.vmem [shape: bf16[20,32], index: 1, kind: input, shape index: {}]   ;;  %s441_s2 = inlined_call_operand.vmem [shape: f32[1,32], index: 2, kind: input, shape index: {}]   ;;  %s442_s3 = inlined_call_operand.vmem [shape: bf16[32,32], index: 3, kind: input, shape index: {}]   ;;  %s443_s4 = inlined_call_operand.vmem [shape: f32[1,32], index: 4, kind: input, shape index: {}]   ;;  %s444_s5 = inlined_call_operand.vmem [shape: bf16[32,3], index: 5, kind: input, shape index: {}]   ;;  %s445_s6 = inlined_call_operand.vmem [shape: f32[1,3], index: 6, kind: input, shape index: {}]   ;;  %s446_s7 = inlined_call_operand.vmem [shape: f32[16,3], index: 7, kind: output, shape index: {}]  }
   0x1   :  { %s18_s25 = sshll.u32 %s347_s24, 4  ;;  %s323_s28 = scalar_lea.hbm %s439_s0, 128  ;;  %s19_s25 = int_to_ptr.vmem [resolvable:$true] %s18_s25 }
   0x2   :  { %p324_p0 = scmp.ne.s32.totalorder %s439_s0, %s323_s28  ;;  %p327_p1 = scmp.lt.u32.totalorder %s323_s28, %s439_s0 }
   0x4   :  { %p329_p2 = pnand %p327_p1, %p324_p0 }
   0x6   :  { %332 = shalt.err (!%p329_p2)
}
   0x7   :  { %s333_s10 = scalar_lea.vmem %s19_s25, 128  ;;  %p338_p4 = scmp.lt.s32.totalorder %s19_s25, %s19_s25 }
   0x8   :  { %p334_p3 = scmp.ne.s32.totalorder %s19_s25, %s333_s10  ;;  %p339_p5 = scmp.lt.s32.totalorder %s333_s10, %s333_s10 }
   0xa   :  { %p340_p6 = por %p339_p5, %p338_p4 }
   0xc   :  { %p341_p7 = pnand %p340_p6, %p334_p3 }
   0xe   :  { %344 = shalt.err (!%p341_p7)
}
   0xf   :  { %s348_s11 = smov 64   ;;  %s349_s12 = smov 4  }
  0x10   :  { %24 = dma.hbm_to_vmem [thread:$0]  %s439_s0, 128, %s19_s25, [#allocation3], %s348_s11, %s348_s11, %s349_s12  }
  0x11   :  { %345 = dma.done.wait [#allocation3], 128  }
  0x12   :  { %346 = vsyncadd [#allocation3], 4294967168  ;;  %v350_v0 = vmov 0.0   ;;  %vm351_vm0 = vmmov 0   ;;  %v316_v1 = vld [vmem:[%s440_s1] sm:$0xff]   ;;  %vm71_vm1 = vcmask 1041408  }
  0x13   :  { %287 = vmatprep.subr.bf16.mxu0 %v350_v0  ;;  %291 = vmatprep.mubr.msk.bf16.mxu0 %vm351_vm0, %v350_v0  ;;  %v317_v2 = vld [vmem:[%s440_s1 + $0x8] ss:$0 sps:$4 sm:$0x33]   ;;  %v318_v4 = vld [vmem:[#allocation2] sm:$0xff]   ;;  %vm67_vm2 = vcmask 162816   ;;  %vm142_vm3 = vcmask 261120  }
  0x14   :  { %295 = vmatprep.subr.bf16.mxu1 %v350_v0  ;;  %299 = vmatprep.mubr.msk.bf16.mxu1 %vm351_vm0, %v350_v0  ;;  %v73_v3 = vsel %vm71_vm1, %v317_v2, 0  ;;  %v319_v5 = vld [vmem:[%s442_s3] sm:$0xff]   ;;  %v320_v6 = vld [vmem:[%s442_s3 + $0x8] sm:$0xff]   ;;  %vm257_vm4 = vcmask 23552  }
  0x15   :  { %288 = vmatpush3.bf16.msra.mxu0 %v316_v1  ;;  %296 = vmatpush3.bf16.msra.mxu1 %v319_v5  ;;  %v265_v7 = vld [vmem:[%s441_s2] ss:$0 sm:$0xff]  ;;  %v322_v18 = vld [vmem:[%s444_s5 + $0x8] sm:$0xff]  }
  0x16   :  { %289 = vmatprep.subr.bf16.mxu0 %v350_v0  ;;  %297 = vmatprep.subr.bf16.mxu1 %v350_v0  ;;  %v321_v17 = vld [vmem:[%s444_s5] sm:$0xff]  }
  0x17   :  { %v270_v19 = vld [vmem:[%s443_s4] ss:$0 sm:$0xff] }
  0x18   :  { %v274_v29 = vld [vmem:[%s445_s6] ss:$0 sm:$0xff] }
  0x19   :  { %290 = vmatpush3.bf16.msra.mxu0 %v73_v3  ;;  %298 = vmatpush3.bf16.msra.mxu1 %v320_v6 }
  0x1a   :  { %303 = vmatprep.subr.bf16.mxu0 %v350_v0 }
  0x1c   :  { %292 = vmatmul.mubr.msk.bf16.vlgmr.msra.gmra.mrb[0].mxu0 %vm67_vm2, %v318_v4 }
  0x1d   :  { %307 = vmatprep.mubr.msk.bf16.mxu0 %vm351_vm0, %v350_v0  ;;  %304 = vmatpush3.bf16.msra.mxu0 %v321_v17 }
  0x1e   :  { %305 = vmatprep.subr.bf16.mxu0 %v350_v0 }
  0x21   :  { %306 = vmatpush3.bf16.msra.mxu0 %v322_v18 }
  0xef   :  { %v109_v8 = vpop.f32.mrb[0].mxu0 }
  0xf0   :  { %v110_v9 = vadd.f32 %v265_v7, %v109_v8  ;;  %v293_v10 = vpop.f32.mrb[1].mxu0 }
  0xf1   :  { %v112_v11 = vpop.f32.mrb[2].mxu0 }
  0xf2   :  { %v113_v12 = vadd.f32 %v265_v7, %v112_v11  ;;  %v294_v13 = vpop.f32.mrb[3].mxu0  ;;  %v116_v14 = vmax.f32 %v110_v9, 0.0 }
  0xf4   :  { %v117_v15 = vmax.f32 %v113_v12, 0.0 }
  0xf6   :  { %v123_v16 = vpack.c.bf16 %v117_v15, %v116_v14 }
  0xf8   :  { %300 = vmatmul.mubr.msk.bf16.vlgmr.msra.gmra.mrb[0].mxu1 %vm142_vm3, %v123_v16 }
 0x1cb   :  { %v180_v20 = vpop.f32.mrb[0].mxu1 }
 0x1cc   :  { %v181_v21 = vadd.f32 %v270_v19, %v180_v20  ;;  %v301_v22 = vpop.f32.mrb[1].mxu1 }
 0x1cd   :  { %v183_v23 = vpop.f32.mrb[2].mxu1 }
 0x1ce   :  { %v184_v24 = vadd.f32 %v270_v19, %v183_v23  ;;  %v302_v25 = vpop.f32.mrb[3].mxu1  ;;  %v187_v26 = vmax.f32 %v181_v21, 0.0 }
 0x1d0   :  { %v188_v27 = vmax.f32 %v184_v24, 0.0 }
 0x1d2   :  { %v194_v28 = vpack.c.bf16 %v188_v27, %v187_v26 }
 0x1d4   :  { %308 = vmatmul.mubr.msk.bf16.vlgmr.msra.gmra.mrb[4].mxu0 %vm142_vm3, %v194_v28 }
 0x2a7   :  { %v250_v30 = vpop.f32.mrb[4].mxu0 }
 0x2a8   :  { %v251_v31 = vadd.f32 %v274_v29, %v250_v30  ;;  %v309_v32 = vpop.f32.mrb[5].mxu0 }
 0x2a9   :  { %v253_v33 = vpop.f32.mrb[6].mxu0 }
 0x2aa   :  { %258 = vst.msk [vmem:[%s446_s7] sm:$0xff] %vm257_vm4, %v251_v31  ;;  %v254_v34 = vadd.f32 %v274_v29, %v253_v33  ;;  %v310_v35 = vpop.f32.mrb[7].mxu0 }
 0x2ac   :  { %259 = vst.msk [vmem:[%s446_s7 + $0x8] sm:$0xff] %vm257_vm4, %v254_v34 }
 0x2ad   :  { %264 = vsyncpa [#allocation3], 1 }

</bundles_post_ra>
